<compile_context>
chip_gen: v7x
topology: tpu7x:2x2x1
jax: 0.10.0
libtpu: 0.0.40
codegen_flags: <defaults>
</compile_context>

<pallas_src>
import functools
import math

import jax
import jax.numpy as jnp
from jax import lax
from jax.experimental import pallas as pl
from jax.experimental.pallas import tpu as pltpu

_LANE = 128


def _round_up(v, m):
    return ((v + m - 1) // m) * m


def _pointnet_kernel(x_ref, w1_ref, b1_ref, w2_ref, b2_ref, o_ref, *, n, cb):
    # x_ref : (tb*n, C)   f32  (pre-flattened in the wrapper, no in-kernel reshape)
    # w1_ref: (C,   D1p)  f32     b1_ref: (1, D1p) f32
    # w2_ref: (D1p, D2p)  f32     b2_ref: (1, D2p) f32
    # o_ref : (tb,  D2p)  f32  (lane-dense; sliced back to (B, D2) in the wrapper)
    tb = o_ref.shape[0]
    n_chunks = tb // cb          # static; wrapper guarantees cb | tb
    rows = cb * n                # rows of x per chunk (whole clouds only)

    # Hoist loop-invariant weight/bias loads out of the chunk loop.
    w1 = w1_ref[...]
    w2 = w2_ref[...]
    b1 = b1_ref[...]
    b2 = b2_ref[...]

    def chunk(i, carry):
        r0 = pl.multiple_of(i * rows, rows)
        xs = x_ref[pl.ds(r0, rows), :]                                 # (cb*n, C)
        # Layer 1: pointwise conv == matmul over the channel dim, + bias, ReLU.
        h = jnp.maximum(
            jnp.dot(xs, w1, preferred_element_type=jnp.float32) + b1, 0.0)
        # Layer 2 (no activation), then max-pool over the n points of each cloud.
        y = jnp.dot(h, w2, preferred_element_type=jnp.float32)         # (cb*n, D2p)
        pooled = jnp.max(y.reshape(cb, n, -1), axis=1)                 # (cb, D2p)
        # b2 commutes with the max over points: one add per cloud.
        c0 = pl.multiple_of(i * cb, cb)
        o_ref[pl.ds(c0, cb), :] = pooled + b2
        return carry

    lax.fori_loop(0, n_chunks, chunk, 0, unroll=(n_chunks <= 8))


def pointnet_encoder(x, w1, b1, w2, b2, *, tb=None):
    """x: (B, N, C); conv weights PyTorch-style: w_i (out, in), b_i (out,)."""
    B, N, C = x.shape
    D1 = w1.shape[0]
    D2 = w2.shape[0]

    D1p = _round_up(D1, _LANE)       # lane-dense hidden width
    D2p = _round_up(D2, _LANE)       # lane-dense output width (unmasked stores)
    lane_c = _round_up(C, _LANE)     # VMEM lane padding of the x block

    # ---- batch tile selection -------------------------------------------
    if tb is None:
        # Budget ~16 MiB for the double-buffered, lane-padded f32 x block
        # (fits comfortably inside v7x's 64 MiB VMEM with headroom; v5e/v6e
        # could go larger but this already amortizes per-step overhead).
        x_buf_per_cloud = N * lane_c * 4
        tb_cap = max(1, (16 << 20) // (2 * x_buf_per_cloud))
        tb_cap = min(tb_cap, 1024)
        # Guarantee >= 2 grid steps (when B >= 2) so v7x's second TensorCore
        # gets a slice of the batch via dimension_semantics=("parallel",).
        cap = min(tb_cap, max(1, (B + 1) // 2))
        # Prefer a tile that divides B (no padded clouds / wasted compute),
        # but never shrink below cap/4 just to get divisibility.
        tb = next((d for d in range(cap, 0, -1)
                   if B % d == 0 and d * 4 >= cap), cap)
    tb = max(1, min(tb, B))
    nb = -(-B // tb)
    Bp = nb * tb

    # Clouds per in-kernel chunk: aim for ~256 rows per matmul so the f32
    # h/y intermediates stay small even for large tb; must divide tb.
    cb = min(tb, max(1, 256 // max(N, 1)))
    while tb % cb:
        cb -= 1

    # ---- operand preparation (minimal HBM passes over x) ----------------
    x2 = jnp.asarray(x, jnp.float32).reshape(B * N, C)   # reshape is free
    if Bp != B:
        # Only when tb does not divide B (rare given the divisor preference);
        # padded clouds are computed and sliced away below.
        x2 = jnp.pad(x2, ((0, (Bp - B) * N), (0, 0)))
    x3 = x2.reshape(nb, tb * N, C)

    # Zero-padded weights/biases: padded channels contribute exactly zero and
    # every output store is lane-dense (128-multiple minor dim).
    w1t = jnp.zeros((C, D1p), jnp.float32).at[:, :D1].set(
        jnp.asarray(w1, jnp.float32).T)
    w2t = jnp.zeros((D1p, D2p), jnp.float32).at[:D1, :D2].set(
        jnp.asarray(w2, jnp.float32).T)
    b1r = jnp.zeros((1, D1p), jnp.float32).at[:, :D1].set(
        jnp.asarray(b1, jnp.float32)[None, :])
    b2r = jnp.zeros((1, D2p), jnp.float32).at[:, :D2].set(
        jnp.asarray(b2, jnp.float32)[None, :])

    # ---- VMEM budget (scaled with the working set) -----------------------
    vmem_est = (2 * tb * N * lane_c * 4                 # x block, double-buffered
                + 2 * tb * D2p * 4                      # out block, double-buffered
                + 2 * (C * D1p + D1p * D2p + D1p + D2p) * 4   # weights/biases
                + cb * N * (D1p + D2p) * 4)             # per-chunk intermediates
    vmem_limit = int(min(max(int(vmem_est * 1.5) + (4 << 20), 32 << 20), 56 << 20))

    out = pl.pallas_call(
        functools.partial(_pointnet_kernel, n=N, cb=cb),
        out_shape=jax.ShapeDtypeStruct((nb, tb, D2p), jnp.float32),
        grid_spec=pltpu.PrefetchScalarGridSpec(
            num_scalar_prefetch=0,
            grid=(nb,),
            in_specs=[
                # x: leading tile axis squeezed; last two dims are the full
                # array dims so any (tb, N, C) is layout-legal.
                pl.BlockSpec((None, tb * N, C), lambda b: (b, 0, 0)),
                # Weights/biases: constant index maps; tiny here.  If D1/D2
                # grow to real PointNet sizes (e.g. 1024), consider
                # pipeline_mode=pl.Buffered(1) to halve their VMEM residency.
                pl.BlockSpec((C, D1p), lambda b: (0, 0)),
                pl.BlockSpec((1, D1p), lambda b: (0, 0)),
                pl.BlockSpec((D1p, D2p), lambda b: (0, 0)),
                pl.BlockSpec((1, D2p), lambda b: (0, 0)),
            ],
            out_specs=pl.BlockSpec((None, tb, D2p), lambda b: (b, 0, 0)),
        ),
        compiler_params=pltpu.CompilerParams(
            dimension_semantics=("parallel",),
            vmem_limit_bytes=vmem_limit,
        ),
    )(x3, w1t, b1r, w2t, b2r)

    return out.reshape(Bp, D2p)[:B, :D2]


def _reference(x, w1, b1, w2, b2):
    # Pure-JAX f32 reference matching the PyTorch forward (pool=True).
    h = jnp.maximum(jnp.einsum("bnc,dc->bnd", x, w1) + b1[None, None, :], 0.0)
    y = jnp.einsum("bnd,ed->bne", h, w2) + b2[None, None, :]
    return jnp.max(y, axis=1)                               # (B, D2)


if __name__ == "__main__":
    # Small shapes consistent with the module: B=2 clouds, N=64 points,
    # input_dim=8, mlp_dims=[32, 64] (pool=True).
    B, N, C = 2, 64, 8
    D1, D2 = 32, 64

    key = jax.random.PRNGKey(0)
    kx, kw1, kb1, kw2, kb2 = jax.random.split(key, 5)

    x = jax.random.normal(kx, (B, N, C), dtype=jnp.float32)
    w1 = jax.random.normal(kw1, (D1, C), dtype=jnp.float32) * (1.0 / math.sqrt(C))
    b1 = jax.random.normal(kb1, (D1,), dtype=jnp.float32) * 0.01
    w2 = jax.random.normal(kw2, (D2, D1), dtype=jnp.float32) * (1.0 / math.sqrt(D1))
    b2 = jax.random.normal(kb2, (D2,), dtype=jnp.float32) * 0.01

    out = jax.block_until_ready(pointnet_encoder(x, w1, b1, w2, b2))
    ref = _reference(x, w1, b1, w2, b2)

    assert out.shape == (B, D2), out.shape
    # f32 everywhere (default TPU matmul passes may still use bf16 internally),
    # so a moderate tolerance is amply safe.
    assert jnp.allclose(out, ref, atol=5e-2, rtol=5e-2), float(jnp.max(jnp.abs(out - ref)))

    print("KERNEL_OK")
</pallas_src>

<mosaic_0001>
module attributes {stable_mosaic.version = 11 : i64} {
  func.func @_pointnet_kernel(%arg0: i32, %arg1: memref<1x64x8xf32, #tpu.memory_space<vmem>>, %arg2: memref<8x128xf32, #tpu.memory_space<vmem>>, %arg3: memref<1x128xf32, #tpu.memory_space<vmem>>, %arg4: memref<128x128xf32, #tpu.memory_space<vmem>>, %arg5: memref<1x128xf32, #tpu.memory_space<vmem>>, %arg6: memref<1x1x128xf32, #tpu.memory_space<vmem>>) attributes {dimension_semantics = [#tpu.dimension_semantics<parallel>], iteration_bounds = array<i64: 2>, scalar_prefetch = 0 : i64, scratch_operands = 0 : i64, tpu.core_type = #tpu.core_type<tc>, window_params = [{transform_indices = @transform_0, window_bounds = array<i64: 1, 64, 8>}, {pipeline_mode = #tpu.pipeline_mode<synchronous>, transform_indices = @transform_1, window_bounds = array<i64: 8, 128>}, {pipeline_mode = #tpu.pipeline_mode<synchronous>, transform_indices = @transform_2, window_bounds = array<i64: 1, 128>}, {pipeline_mode = #tpu.pipeline_mode<synchronous>, transform_indices = @transform_3, window_bounds = array<i64: 128, 128>}, {pipeline_mode = #tpu.pipeline_mode<synchronous>, transform_indices = @transform_4, window_bounds = array<i64: 1, 128>}, {transform_indices = @transform_5, window_bounds = array<i64: 1, 1, 128>}]} {
    %c0 = arith.constant 0 : index
    %c0_0 = arith.constant 0 : index
    %0 = vector.load %arg2[%c0, %c0_0] : memref<8x128xf32, #tpu.memory_space<vmem>>, vector<8x128xf32>
    %c0_1 = arith.constant 0 : index
    %c0_2 = arith.constant 0 : index
    %1 = vector.load %arg4[%c0_1, %c0_2] : memref<128x128xf32, #tpu.memory_space<vmem>>, vector<128x128xf32>
    %c0_3 = arith.constant 0 : index
    %c0_4 = arith.constant 0 : index
    %2 = vector.load %arg3[%c0_3, %c0_4] : memref<1x128xf32, #tpu.memory_space<vmem>>, vector<1x128xf32>
    %c0_5 = arith.constant 0 : index
    %c0_6 = arith.constant 0 : index
    %3 = vector.load %arg5[%c0_5, %c0_6] : memref<1x128xf32, #tpu.memory_space<vmem>>, vector<1x128xf32>
    %c0_i32 = arith.constant 0 : i32
    %c64_i32 = arith.constant 64 : i32
    %4 = arith.muli %c0_i32, %c64_i32 : i32
    %5 = tpu.assume_multiple %4, 64 : i32
    %c0_7 = arith.constant 0 : index
    %6 = arith.index_cast %5 : i32 to index
    %c0_8 = arith.constant 0 : index
    %7 = vector.load %arg1[%c0_7, %6, %c0_8] : memref<1x64x8xf32, #tpu.memory_space<vmem>>, vector<1x64x8xf32>
    %8 = vector.shape_cast %7 : vector<1x64x8xf32> to vector<64x8xf32>
    %cst = arith.constant dense<0.000000e+00> : vector<64x128xf32>
    %9 = tpu.matmul %8, %0, %cst {dimension_numbers = #tpu.dot_dimension_numbers<[1], [0], [0], [1], [0, 0, 1, 1], [], []>} : vector<64x8xf32>, vector<8x128xf32>, vector<64x128xf32> -> vector<64x128xf32>
    %10 = vector.broadcast %2 : vector<1x128xf32> to vector<64x128xf32>
    %11 = arith.addf %9, %10 : vector<64x128xf32>
    %cst_9 = arith.constant 0.000000e+00 : f32
    %12 = vector.broadcast %cst_9 : f32 to vector<64x128xf32>
    %13 = arith.maximumf %11, %12 : vector<64x128xf32>
    %cst_10 = arith.constant dense<0.000000e+00> : vector<64x128xf32>
    %14 = tpu.matmul %13, %1, %cst_10 {dimension_numbers = #tpu.dot_dimension_numbers<[1], [0], [0], [1], [0, 0, 1, 1], [], []>} : vector<64x128xf32>, vector<128x128xf32>, vector<64x128xf32> -> vector<64x128xf32>
    %15 = vector.shape_cast %14 : vector<64x128xf32> to vector<1x64x128xf32>
    %cst_11 = arith.constant dense<0xFF800000> : vector<1x128xf32>
    %16 = vector.multi_reduction <maximumf>, %15, %cst_11 [1] : vector<1x64x128xf32> to vector<1x128xf32>
    %c1_i32 = arith.constant 1 : i32
    %17 = arith.muli %c0_i32, %c1_i32 : i32
    %18 = tpu.assume_multiple %17, 1 : i32
    %19 = arith.addf %16, %3 : vector<1x128xf32>
    %c0_12 = arith.constant 0 : index
    %20 = arith.index_cast %18 : i32 to index
    %c0_13 = arith.constant 0 : index
    %21 = vector.load %arg6[%c0_12, %20, %c0_13] : memref<1x1x128xf32, #tpu.memory_space<vmem>>, vector<1x1x128xf32>
    %22 = vector.shape_cast %21 : vector<1x1x128xf32> to vector<1x128xf32>
    %23 = vector.shape_cast %19 : vector<1x128xf32> to vector<1x1x128xf32>
    tpu.vector_store %arg6[%c0_12, %20, %c0_13], %23 {strides = array<i32>} : memref<1x1x128xf32, #tpu.memory_space<vmem>>, vector<1x1x128xf32>,
    %c1_i32_14 = arith.constant 1 : i32
    return
  }
  func.func @transform_0(%arg0: i32) -> (i32, i32, i32) {
    %c0_i32 = arith.constant 0 : i32
    %c0_i32_0 = arith.constant 0 : i32
    %c0_i32_1 = arith.constant 0 : i32
    return %arg0, %c0_i32, %c0_i32_0 : i32, i32, i32
  }
  func.func @transform_1(%arg0: i32) -> (i32, i32) {
    %c0_i32 = arith.constant 0 : i32
    %c0_i32_0 = arith.constant 0 : i32
    %c0_i32_1 = arith.constant 0 : i32
    return %c0_i32, %c0_i32_0 : i32, i32
  }
  func.func @transform_2(%arg0: i32) -> (i32, i32) {
    %c0_i32 = arith.constant 0 : i32
    %c0_i32_0 = arith.constant 0 : i32
    %c0_i32_1 = arith.constant 0 : i32
    return %c0_i32, %c0_i32_0 : i32, i32
  }
  func.func @transform_3(%arg0: i32) -> (i32, i32) {
    %c0_i32 = arith.constant 0 : i32
    %c0_i32_0 = arith.constant 0 : i32
    %c0_i32_1 = arith.constant 0 : i32
    return %c0_i32, %c0_i32_0 : i32, i32
  }
  func.func @transform_4(%arg0: i32) -> (i32, i32) {
    %c0_i32 = arith.constant 0 : i32
    %c0_i32_0 = arith.constant 0 : i32
    %c0_i32_1 = arith.constant 0 : i32
    return %c0_i32, %c0_i32_0 : i32, i32
  }
  func.func @transform_5(%arg0: i32) -> (i32, i32, i32) {
    %c0_i32 = arith.constant 0 : i32
    %c0_i32_0 = arith.constant 0 : i32
    %c0_i32_1 = arith.constant 0 : i32
    return %arg0, %c0_i32, %c0_i32_0 : i32, i32, i32
  }
}

</mosaic_0001>

<bundles_post_ra>
// kernel: tpu_custom_call.1
= control target key start
LH: loop header
LB: loop body
LE: loop exit
PB: predicated region body
PF: predicated region fallthrough
CT: control target
= control target key end

     0   :  { %10 = vsyncpa [#allocation3], 0  ;;  %s1048_s0 = inlined_call_operand.vmem [shape: f32[2,64,8], index: 0, kind: input, shape index: {}]   ;;  %s1049_s1 = inlined_call_operand.vmem [shape: f32[8,128], index: 1, kind: input, shape index: {}]   ;;  %s1050_s2 = inlined_call_operand.vmem [shape: f32[1,128], index: 2, kind: input, shape index: {}]   ;;  %s1051_s3 = inlined_call_operand.vmem [shape: f32[128,128], index: 3, kind: input, shape index: {}]   ;;  %s1052_s4 = inlined_call_operand.vmem [shape: f32[1,128], index: 4, kind: input, shape index: {}]   ;;  %s1053_s5 = inlined_call_operand.hbm [shape: f32[2,1,128], index: 5, kind: output, shape index: {}]  }
   0x1   :  { %12 = vsyncpa [#allocation3 + $0x1], 0  ;;  %s873_s18 = smov 0   ;;  %s875_s19 = smov 0  }
   0x2   :  { %s877_s20 = smov 0   ;;  %s879_s21 = smov 0  }
   0x3 LB: > { %s894_s22 = sadd.s32 4294967295, %s840_s21   ;;  %s581_s23 = sadd.s32 4294967294, %s840_s21   ;;  %s840_s21 = sphi %s879_s21, %s1059_s21   ;;  %s836_s20 = sphi %s877_s20, %s1058_s20   ;;  %s832_s19 = sphi %s875_s19, %s1057_s19   ;;  %s828_s18 = sphi %s873_s18, %s1056_s18  }
   0x4   : > { %s898_s24 = sadd.s32 1, %s840_s21   ;;  %s135_s25 = sadd.s32 1, %s836_s20 }
   0x5   : > { %s132_s26 = ssub.s32 %s840_s21, %s898_s24  ;;  %p145_p0 = scmp.ne.s32.totalorder %s836_s20, %s832_s19 }
   0x6   : > { %p133_p1 = scmp.eq.s32.totalorder %s132_s26, 0  ;;  %p146_p2 = scmp.eq.s32.totalorder %s894_s22, 1 }
   0x7   : > { %p151_p3 = scmp.ne.s32.totalorder %s832_s19, %s828_s18  ;;  %p152_p4 = scmp.eq.s32.totalorder %s581_s23, 1 }
   0x8   : > { %s909_s27 = scalar_select %p133_p1, %s836_s20, %s135_s25  }
   0x9   : > { %p911_p5 = por %p146_p2, %p145_p0  ;;  %p915_p6 = por %p152_p4, %p151_p3 }
   0xa   : > { %p584_p7 = scmp.ge.s32.totalorder %s840_s21, 1  ;;  %p190_p8 = scmp.lt.s32.totalorder %s840_s21, 3 }
   0xc   : > { %p191_p9 = pnand %p584_p7, %p190_p8 }
   0xd   : > { %v222_v0 = vld [vmem:[%s1049_s1] sm:$0xff] (!%p191_p9)  ;;  %p217_p10 = scmp.lt.s32.totalorder (!%p191_p9), %s894_s22, 1  ;;  %v224_v2 = vld [vmem:[%s1051_s3 + $0x8] sm:$0xff] (!%p191_p9)  ;;  %v225_v4 = vld [vmem:[%s1051_s3 + $0x10] sm:$0xff] (!%p191_p9)  ;;  %vm255_vm0 = vcmask (!%p191_p9), 64512   ;;  %s215_s14 = sand.u32 (!%p191_p9), 1, %s832_s19  }
   0xe   : > { %194 = sbr.rel (%p191_p9) target bundleno = 504 (0x1f8), region = 40  ;;  %v223_v1 = vld [vmem:[%s1051_s3] sm:$0xff] (!%p191_p9)  ;;  %633 = vmatprep.subr.mxu0 (!%p191_p9), %v222_v0  ;;  %v226_v5 = vld [vmem:[%s1051_s3 + $0x18] sm:$0xff] (!%p191_p9)  ;;  %v228_v8 = vld [vmem:[%s1051_s3 + $0x28] sm:$0xff] (!%p191_p9)  ;;  %s596_s17 = sshll.u32 (!%p191_p9), %s894_s22, 4 }
   0xf   : > { %v691_v3 = vpack.c.bf16 (!%p191_p9), %v224_v2, %v223_v1  ;;  %634 = vmatpush3.msra.mxu0 (!%p191_p9), %v222_v0  ;;  %v695_v6 = vpack.c.bf16 (!%p191_p9), %v226_v5, %v225_v4  ;;  %v227_v7 = vld [vmem:[%s1051_s3 + $0x20] sm:$0xff] (!%p191_p9)  ;;  %v229_v14 = vld [vmem:[%s1051_s3 + $0x30] sm:$0xff] (!%p191_p9)  ;;  %v230_v15 = vld [vmem:[%s1051_s3 + $0x38] sm:$0xff] (!%p191_p9)  ;;  %s216_s23 = scalar_lea.vmem (!%p191_p9), [#allocation2], %s215_s14  ;;  %s1006_s7 = scalar_lea.hbm (!%p191_p9), %s1053_s5, %s596_s17 }
  0x10   : > { %v699_v12 = vpack.c.bf16 (!%p191_p9), %v228_v8, %v227_v7  ;;  %v703_v17 = vpack.c.bf16 (!%p191_p9), %v230_v15, %v229_v14  ;;  %v231_v19 = vld [vmem:[%s1051_s3 + $0x40] sm:$0xff] (!%p191_p9)  ;;  %v232_v20 = vld [vmem:[%s1051_s3 + $0x48] sm:$0xff] (!%p191_p9)  ;;  %v233_v23 = vld [vmem:[%s1051_s3 + $0x50] sm:$0xff] (!%p191_p9)  ;;  %s526_s26 = sshll.u32 (!%p191_p9), %s216_s23, 4  ;;  %s514_s8 = scalar_lea.sflag (!%p191_p9), [#allocation3], %s215_s14  ;;  %s1008_s26 = int_to_ptr.vmem [resolvable:$true] %s526_s26 }
  0x11   : > { %692 = vmatprep.subr.bf16.mxu0 (!%p191_p9), %v691_v3  ;;  %723 = vmatprep.subr.bf16.mxu1 (!%p191_p9), %v691_v3  ;;  %v707_v22 = vpack.c.bf16 (!%p191_p9), %v232_v20, %v231_v19  ;;  %v234_v24 = vld [vmem:[%s1051_s3 + $0x58] sm:$0xff] (!%p191_p9)  ;;  %v235_v27 = vld [vmem:[%s1051_s3 + $0x60] sm:$0xff] (!%p191_p9)  ;;  %v236_v28 = vld [vmem:[%s1051_s3 + $0x68] sm:$0xff] (!%p191_p9) }
  0x12   : > { %731 = vmatpush3.bf16.msra.mxu1 (!%p191_p9), %v691_v3  ;;  %v711_v26 = vpack.c.bf16 (!%p191_p9), %v234_v24, %v233_v23  ;;  %v715_v29 = vpack.c.bf16 (!%p191_p9), %v236_v28, %v235_v27  ;;  %v237_v30 = vld [vmem:[%s1051_s3 + $0x70] sm:$0xff] (!%p191_p9)  ;;  %v238_v31 = vld [vmem:[%s1051_s3 + $0x78] sm:$0xff] (!%p191_p9)  ;;  %v587_v33 = vld [vmem:[%s1050_s2] ss:$0 sm:$0xff] (!%p191_p9) }
  0x13   : > { %724 = vmatprep.subr.bf16.mxu1 (!%p191_p9), %v695_v6  ;;  %v719_v32 = vpack.c.bf16 (!%p191_p9), %v238_v31, %v237_v30  ;;  %v240_v14 = vld [vmem:[%s1052_s4] sm:$0x1] (!%p191_p9) }
  0x15   : > { %s218_s15 = scalar_select %p217_p10, %s894_s22, 1 }
  0x16   : > { %732 = vmatpush3.bf16.msra.mxu1 %v695_v6  ;;  %s842_s22 = smov [#allocation2]  }
  0x17   : > { %s599_s16 = sshll.u32 %s218_s15, 6  ;;  %725 = vmatprep.subr.bf16.mxu1 %v699_v12  ;;  %s782_s9 = sshll.u32 %s842_s22, 4  ;;  %s783_s9 = int_to_ptr.vmem [resolvable:$false] %s782_s9 }
  0x18   : > { %s941_s25 = scalar_lea.vmem %s1048_s0, %s599_s16  ;;  %s784_s10 = scalar_lea.vmem %s783_s9, 32 }
  0x19   : > { %v241_v9 = vld [vmem:[%s941_s25] sm:$0xff]  ;;  %v242_v10 = vld [vmem:[%s941_s25 + $0x8] sm:$0xff]  ;;  %v243_v11 = vld [vmem:[%s941_s25 + $0x10] sm:$0xff]  ;;  %p785_p0 = scmp.lt.s32.totalorder %s1008_s26, %s783_s9 }
  0x1a   : > { %635 = vmatprep.mubr.msk.f32.mxu0 %vm255_vm0, %v241_v9  ;;  %v244_v13 = vld [vmem:[%s941_s25 + $0x18] sm:$0xff]  ;;  %v245_v16 = vld [vmem:[%s941_s25 + $0x20] sm:$0xff]  ;;  %733 = vmatpush3.bf16.msra.mxu1 %v699_v12  ;;  %v246_v18 = vld [vmem:[%s941_s25 + $0x28] sm:$0xff] }
  0x1b   : > { %636 = vmatmul.mubr.msk.f32.vlgmr.msra.gmra.mrb[0].mxu0 %vm255_vm0, %v242_v10  ;;  %v247_v21 = vld [vmem:[%s941_s25 + $0x30] sm:$0xff]  ;;  %726 = vmatprep.subr.bf16.mxu1 %v703_v17  ;;  %v248_v25 = vld [vmem:[%s941_s25 + $0x38] sm:$0xff]  ;;  %s778_s25 = scalar_lea.vmem %s1008_s26, 16 }
  0x1c   : > { %638 = vmatprep.mubr.msk.f32.mxu0 %vm255_vm0, %v243_v11  ;;  %694 = vmatpush3.bf16.msra.mxu0 %v691_v3  ;;  %p779_p11 = scmp.ne.s32.totalorder %s1008_s26, %s778_s25  ;;  %p786_p1 = scmp.lt.s32.totalorder %s784_s10, %s778_s25 }
  0x1d   : > { %696 = vmatprep.subr.bf16.mxu0 %v695_v6 }
  0x1e   : > { %734 = vmatpush3.bf16.msra.mxu1 %v703_v17  ;;  %p780_p12 = pnand %p779_p11, %p911_p5  ;;  %p787_p2 = por %p786_p1, %p785_p0 }
  0x1f   : > { %639 = vmatmul.mubr.msk.f32.gmra.mrb[2].mxu0 %vm255_vm0, %v244_v13  ;;  %727 = vmatprep.subr.bf16.mxu1 %v707_v22 }
  0x20   : > { %641 = vmatprep.mubr.msk.f32.mxu0 %vm255_vm0, %v245_v16  ;;  %698 = vmatpush3.bf16.msra.mxu0 %v695_v6  ;;  %p781_p13 = pneg %p780_p12 }
  0x21   : > { %700 = vmatprep.subr.bf16.mxu0 %v699_v12 }
  0x22   : > { %735 = vmatpush3.bf16.msra.mxu1 %v707_v22  ;;  %p788_p3 = pnand %p787_p2, %p781_p13 }
  0x23   : > { %642 = vmatmul.mubr.msk.f32.gmra.mrb[4].mxu0 %vm255_vm0, %v246_v18  ;;  %728 = vmatprep.subr.bf16.mxu1 %v711_v26 }
  0x24   : > { %644 = vmatprep.mubr.msk.f32.mxu0 %vm255_vm0, %v247_v21  ;;  %702 = vmatpush3.bf16.msra.mxu0 %v699_v12 }
  0x25   : > { %704 = vmatprep.subr.bf16.mxu0 %v703_v17 }
  0x26   : > { %736 = vmatpush3.bf16.msra.mxu1 %v711_v26 }
  0x27   : > { %645 = vmatmul.mubr.msk.f32.gmra.mrb[6].mxu0 %vm255_vm0, %v248_v25  ;;  %729 = vmatprep.subr.bf16.mxu1 %v715_v29 }
  0x28   : > { %706 = vmatpush3.bf16.msra.mxu0 %v703_v17 }
  0x29   : > { %708 = vmatprep.subr.bf16.mxu0 %v707_v22 }
  0x2a   : > { %737 = vmatpush3.bf16.msra.mxu1 %v715_v29 }
  0x2b   : > { %730 = vmatprep.subr.bf16.mxu1 %v719_v32 }
  0x2c   : > { %710 = vmatpush3.bf16.msra.mxu0 %v707_v22 }
  0x2d   : > { %712 = vmatprep.subr.bf16.mxu0 %v711_v26 }
  0x2e   : > { %738 = vmatpush3.bf16.msra.mxu1 %v719_v32 }
  0x30   : > { %714 = vmatpush3.bf16.msra.mxu0 %v711_v26 }
  0x31   : > { %716 = vmatprep.subr.bf16.mxu0 %v715_v29 }
  0x34   : > { %718 = vmatpush3.bf16.msra.mxu0 %v715_v29 }
  0x35   : > { %720 = vmatprep.subr.bf16.mxu0 %v719_v32 }
  0x38   : > { %722 = vmatpush3.bf16.msra.mxu0 %v719_v32 }
  0xee   : > { %v637_v34 = vpop.f32.mrb[0].mxu0 }
  0xef   : > { %v352_v35 = vadd.f32 %v637_v34, %v587_v33  ;;  %v346_v36 = vpop.f32.mrb[1].mxu0 }
  0xf0   : > { %v347_v37 = vadd.f32 %v587_v33, %v346_v36 }
  0xf1   : > { %v386_v40 = vmax.f32 %v352_v35, 0.0 }
  0xf2   : > { %v385_v38 = vmax.f32 %v347_v37, 0.0  ;;  %v640_v39 = vpop.f32.mrb[2].mxu0 }
  0xf3   : > { %v362_v41 = vadd.f32 %v640_v39, %v587_v33  ;;  %v356_v42 = vpop.f32.mrb[3].mxu0 }
  0xf4   : > { %679 = vmatprep.mubr.f32.mxu0 %v385_v38  ;;  %v357_v43 = vadd.f32 %v587_v33, %v356_v42 }
  0xf5   : > { %680 = vmatmul.mubr.f32.vlgmr.msra.gmra.mrb[8].mxu0 %v386_v40  ;;  %v388_v46 = vmax.f32 %v362_v41, 0.0 }
  0xf6   : > { %v643_v44 = vpop.f32.mrb[4].mxu0  ;;  %v387_v45 = vmax.f32 %v357_v43, 0.0 }
  0xf7   : > { %v372_v47 = vadd.f32 %v643_v44, %v587_v33  ;;  %v366_v48 = vpop.f32.mrb[5].mxu0 }
  0xf8   : > { %v367_v49 = vadd.f32 %v587_v33, %v366_v48  ;;  %682 = vmatprep.mubr.f32.mxu1 %v387_v45 }
  0xf9   : > { %683 = vmatmul.mubr.f32.vlgmr.msra.gmra.mrb[0].mxu1 %v388_v46  ;;  %v390_v52 = vmax.f32 %v372_v47, 0.0 }
  0xfa   : > { %v389_v50 = vmax.f32 %v367_v49, 0.0  ;;  %v646_v51 = vpop.f32.mrb[6].mxu0 }
  0xfb   : > { %v382_v53 = vadd.f32 %v646_v51, %v587_v33  ;;  %v376_v54 = vpop.f32.mrb[7].mxu0 }
  0xfc   : > { %v377_v55 = vadd.f32 %v587_v33, %v376_v54  ;;  %685 = vmatprep.mubr.f32.mxu1 %v389_v50 }
  0xfd   : > { %686 = vmatmul.mubr.f32.gmra.mrb[2].mxu1 %v390_v52  ;;  %v392_v57 = vmax.f32 %v382_v53, 0.0 }
  0xfe   : > { %v391_v56 = vmax.f32 %v377_v55, 0.0 }
 0x100   : > { %688 = vmatprep.mubr.f32.mxu1 %v391_v56 }
 0x101   : > { %689 = vmatmul.mubr.f32.gmra.mrb[4].mxu1 %v392_v57 }
 0x1c8   : > { %v681_v58 = vpop.f32.mrb[8].mxu0 }
 0x1c9   : > { %v459_v59 = vpop.f32.mrb[9].mxu0 }
 0x1cc   : > { %v684_v60 = vpop.f32.mrb[0].mxu1 }
 0x1cd   : > { %v469_v61 = vpop.f32.mrb[1].mxu1 }
 0x1d0   : > { %v687_v62 = vpop.f32.mrb[2].mxu1 }
 0x1d1   : > { %v499_v63 = vmax.f32 %v681_v58, %v687_v62  ;;  %v479_v0 = vpop.f32.mrb[3].mxu1 }
 0x1d2   : > { %v498_v1 = vmax.f32 %v459_v59, %v479_v0 }
 0x1d4   : > { %v502_v2 = vmax.f32 %v498_v1, %v499_v63  ;;  %v690_v3 = vpop.f32.mrb[4].mxu1 }
 0x1d5   : > { %v501_v4 = vmax.f32 %v684_v60, %v690_v3  ;;  %v489_v5 = vpop.f32.mrb[5].mxu1 }
 0x1d6   : > { %v500_v6 = vmax.f32 %v469_v61, %v489_v5 }
 0x1d8   : > { %v503_v7 = vmax.f32 %v500_v6, %v501_v4 }
 0x1da   : > { %v504_v8 = vmax.f32 %v502_v2, %v503_v7 }
 0x1dc   : > { %v505_v9 = vrot.slane %v504_v8, 4 }
 0x1de   : > { %v506_v10 = vmax.f32 %v504_v8, %v505_v9 }
 0x1e0   : > { %v507_v11 = vrot.slane %v506_v10, 2 }
 0x1e2   : > { %v508_v12 = vmax.f32 %v506_v10, %v507_v11 }
 0x1e4   : > { %v509_v13 = vrot.slane %v508_v12, 1 }
 0x1e6   : > { %v510_v15 = vmax.f32 %v508_v12, %v509_v13 }
 0x1e8   : > { %v511_v16 = vadd.f32 %v510_v15, %v240_v14 }
 0x1ea   : > { %512 = vst [vmem:[%s216_s23] sm:$0x1] %v511_v16 }
 0x1eb   : > { %791 = shalt.err (!%p788_p3)
}
 0x1ec   : > { %s792_s11 = scalar_lea.hbm %s1006_s7, 16  ;;  %s796_s14 = scalar_lea.hbm %s1053_s5, 32 }
 0x1ed   : > { %p793_p4 = scmp.ne.s32.totalorder %s1006_s7, %s792_s11  ;;  %p797_p9 = scmp.lt.u32.totalorder %s1006_s7, %s1053_s5 }
 0x1ee   : > { %p798_p10 = scmp.lt.u32.totalorder %s796_s14, %s792_s11  ;;  %p800_p12 = scmp.lt.u32.totalorder %s792_s11, %s1006_s7 }
 0x1ef   : > { %p794_p7 = pnand %p793_p4, %p911_p5 }
 0x1f0   : > { %p799_p11 = por %p798_p10, %p797_p9 }
 0x1f1   : > { %p795_p8 = pneg %p794_p7 }
 0x1f2   : > { %p801_p13 = por %p800_p12, %p799_p11 }
 0x1f4   : > { %p802_p0 = pnand %p801_p13, %p795_p8 }
 0x1f6   : > { %805 = shalt.err (!%p802_p0)
}
 0x1f7   : > { %739 = dma.vmem_to_hbm [thread:$0]  (%p911_p5), %s1008_s26, 16, %s1006_s7, %s514_s8  }
 0x1f8 PF: > { %p745_p1 = scmp.ge.s32.totalorder %s840_s21, 2  ;;  %s538_s17 = sand.u32 1, %s828_s18  }
 0x1f9   : > { %s539_s23 = scalar_lea.sflag [#allocation3], %s538_s17 }
 0x1fa   : > { %p742_p2 = pnand %p745_p1, %p915_p6 }
 0x1fc   : > { %823 = dma.done.wait (!%p742_p2), %s539_s23, 16  }
 0x1fd   : > { %825 = vsyncadd (!%p742_p2), %s539_s23, 4294967280  ;;  %p15_p3 = scmp.ge.s32.totalorder %s898_s24, 4   ;;  %s1056_s18 = smov %s832_s19 }
 0x1fe   : > { %s1057_s19 = smov %s836_s20  ;;  %s1058_s20 = smov %s909_s27 }
 0x1ff   : > { %s1059_s21 = smov %s898_s24  ;;  %17 = sbr.rel (!%p15_p3) target bundleno = 3 (0x3), region = 75 }
 0x206   :  { %543 = vsyncpa [#allocation3], 1 }
 0x207   :  { %545 = vsyncpa [#allocation3 + $0x1], 1 }

</bundles_post_ra>
